<compile_context>
chip_gen: v5e
topology: v5e:2x2
jax: 0.10.0
libtpu: 0.0.40
codegen_flags: <defaults>
</compile_context>

<pallas_src>
import functools
import math

import jax
import jax.numpy as jnp
from jax import lax
from jax.experimental import pallas as pl
from jax.experimental.pallas import tpu as pltpu


def _cdiv(a, b):
    return -(-a // b)


def _round_up(n, m):
    return _cdiv(n, m) * m


def _pick_row_tile(n, row_tile):
    # Aim for >= 2 grid steps so double-buffering can overlap the row DMA and
    # output writeback with the matmul, and so both TensorCores on v7x get a
    # share of the "parallel" row axis. Cap at `row_tile` (256 rows ~ f32) so
    # big problems keep many pipeline steps and bounded VMEM.
    return min(row_tile, max(8, _round_up(_cdiv(n, 2), 8)))


# ---------------------------------------------------------------------------
# Row-tiled dense:  y = x @ W + b
# ---------------------------------------------------------------------------
def _dense_kernel(x_ref, w_ref, b_ref, o_ref):
    acc = jnp.dot(x_ref[...], w_ref[...], preferred_element_type=jnp.float32)
    o_ref[...] = (acc + b_ref[...].astype(jnp.float32)).astype(o_ref.dtype)


def _dense(x2, w, b, *, row_tile=256):
    n, h_in = x2.shape
    h_out = w.shape[1]
    tm = _pick_row_tile(n, row_tile)
    n_pad = _round_up(n, tm)
    if n_pad != n:
        x2 = jnp.pad(x2, ((0, n_pad - n), (0, 0)))
    out = pl.pallas_call(
        _dense_kernel,
        out_shape=jax.ShapeDtypeStruct((n_pad, h_out), x2.dtype),
        grid_spec=pltpu.PrefetchScalarGridSpec(
            num_scalar_prefetch=0,
            grid=(n_pad // tm,),
            in_specs=[
                pl.BlockSpec((tm, h_in), lambda i: (i, 0)),    # x rows
                pl.BlockSpec((h_in, h_out), lambda i: (0, 0)),  # W (resident)
                pl.BlockSpec((1, h_out), lambda i: (0, 0)),     # b
            ],
            out_specs=pl.BlockSpec((tm, h_out), lambda i: (i, 0)),
        ),
        compiler_params=pltpu.CompilerParams(
            dimension_semantics=("parallel",)),
    )(x2, w, b)
    return out[:n]


# ---------------------------------------------------------------------------
# Relative-position attention core, one (batch, head) per grid step.
# ---------------------------------------------------------------------------
def _attn_kernel(q_ref, k_ref, v_ref, r_ref, u_ref, vb_ref, m_ref, o_ref, *,
                 scale):
    q = q_ref[0].astype(jnp.float32)          # (S, D)
    k = k_ref[0].astype(jnp.float32)          # (S, D)
    v = v_ref[0].astype(jnp.float32)          # (S, D)
    rel = r_ref[0].astype(jnp.float32)        # (S, S, D)
    u = u_ref[0].astype(jnp.float32)          # (1, D)
    vb = vb_ref[0].astype(jnp.float32)        # (1, D)
    msk = m_ref[0]                            # (1, S) float, 1 = keep

    # A + C term: (q + u) @ k^T
    ac = jnp.einsum('qd,kd->qk', q + u, k,
                    preferred_element_type=jnp.float32)          # (S, S)
    # B + D term: per query row i, contract (q_i + v) with rel[i, :, :]
    bd = jnp.sum((q + vb)[:, None, :] * rel, axis=-1)             # (S, S)

    s = (ac + bd) * scale
    s = jnp.where(msk > 0.0, s, jnp.float32(-1e15))               # masked_fill

    m = jnp.max(s, axis=-1, keepdims=True)
    p = jnp.exp(s - m)
    l = jnp.sum(p, axis=-1, keepdims=True)
    attn = p / l                                                  # softmax

    o_ref[0] = jnp.dot(attn, v,
                       preferred_element_type=jnp.float32).astype(o_ref.dtype)


def _attention(q, k, v, rel, u, v_param, key_mask, *, num_heads, scale):
    b, s, h = q.shape
    d = h // num_heads
    nh = num_heads

    def to_heads(t):  # [B, S, H] -> [B*nH, S, D]
        return t.reshape(b, s, nh, d).transpose(0, 2, 1, 3).reshape(b * nh, s, d)

    qh, kh, vh = to_heads(q), to_heads(k), to_heads(v)
    rh = rel.reshape(b, s, s, nh, d).transpose(0, 3, 1, 2, 4).reshape(
        b * nh, s, s, d)
    u_t = jnp.tile(u.reshape(1, nh, 1, d), (b, 1, 1, 1)).reshape(b * nh, 1, d)
    v_t = jnp.tile(v_param.reshape(1, nh, 1, d),
                   (b, 1, 1, 1)).reshape(b * nh, 1, d)
    mask = jnp.repeat(key_mask.astype(jnp.float32)[:, None, :], nh,
                      axis=1).reshape(b * nh, 1, s)

    kernel = functools.partial(_attn_kernel, scale=scale)
    out = pl.pallas_call(
        kernel,
        out_shape=jax.ShapeDtypeStruct((b * nh, s, d), q.dtype),
        grid_spec=pltpu.PrefetchScalarGridSpec(
            num_scalar_prefetch=0,
            grid=(b * nh,),
            in_specs=[
                pl.BlockSpec((1, s, d), lambda g: (g, 0, 0)),       # Q head
                pl.BlockSpec((1, s, d), lambda g: (g, 0, 0)),       # K head
                pl.BlockSpec((1, s, d), lambda g: (g, 0, 0)),       # V head
                pl.BlockSpec((1, s, s, d), lambda g: (g, 0, 0, 0)),  # rel emb
                pl.BlockSpec((1, 1, d), lambda g: (g, 0, 0)),       # u
                pl.BlockSpec((1, 1, d), lambda g: (g, 0, 0)),       # v param
                pl.BlockSpec((1, 1, s), lambda g: (g, 0, 0)),       # key mask
            ],
            out_specs=pl.BlockSpec((1, s, d), lambda g: (g, 0, 0)),
        ),
        compiler_params=pltpu.CompilerParams(
            dimension_semantics=("parallel",)),
    )(qh, kh, vh, rh, u_t, v_t, mask)

    return out.reshape(b, nh, s, d).transpose(0, 2, 1, 3).reshape(b, s, h)


# ---------------------------------------------------------------------------
# BertSelfOutput: LayerNorm(x @ Wo + bo + residual)
# ---------------------------------------------------------------------------
def _self_output_kernel(x_ref, res_ref, w_ref, b_ref, g_ref, bt_ref, o_ref, *,
                        eps, hidden):
    y = jnp.dot(x_ref[...], w_ref[...], preferred_element_type=jnp.float32)
    y = y + b_ref[...].astype(jnp.float32) + res_ref[...].astype(jnp.float32)

    # One-pass LayerNorm stats (two independent lane reduces), all in f32.
    inv_h = 1.0 / hidden
    s1 = jnp.sum(y, axis=-1, keepdims=True)
    s2 = jnp.sum(y * y, axis=-1, keepdims=True)
    mean = s1 * inv_h
    var = s2 * inv_h - mean * mean
    inv = lax.rsqrt(var + eps)
    o_ref[...] = ((y - mean) * inv * g_ref[...].astype(jnp.float32)
                  + bt_ref[...].astype(jnp.float32)).astype(o_ref.dtype)


def _self_output(x2, res2, w, b, gamma, beta, *, eps, row_tile=256):
    n, h = x2.shape
    tm = _pick_row_tile(n, row_tile)
    n_pad = _round_up(n, tm)
    if n_pad != n:
        x2 = jnp.pad(x2, ((0, n_pad - n), (0, 0)))
        res2 = jnp.pad(res2, ((0, n_pad - n), (0, 0)))
    kernel = functools.partial(_self_output_kernel, eps=eps, hidden=h)
    out = pl.pallas_call(
        kernel,
        out_shape=jax.ShapeDtypeStruct((n_pad, h), x2.dtype),
        grid_spec=pltpu.PrefetchScalarGridSpec(
            num_scalar_prefetch=0,
            grid=(n_pad // tm,),
            in_specs=[
                pl.BlockSpec((tm, h), lambda i: (i, 0)),   # attention output
                pl.BlockSpec((tm, h), lambda i: (i, 0)),   # residual (query)
                pl.BlockSpec((h, h), lambda i: (0, 0)),    # Wo
                pl.BlockSpec((1, h), lambda i: (0, 0)),    # bo
                pl.BlockSpec((1, h), lambda i: (0, 0)),    # gamma
                pl.BlockSpec((1, h), lambda i: (0, 0)),    # beta
            ],
            out_specs=pl.BlockSpec((tm, h), lambda i: (i, 0)),
        ),
        compiler_params=pltpu.CompilerParams(
            dimension_semantics=("parallel",)),
    )(x2, res2, w, b, gamma, beta)
    return out[:n]


# ---------------------------------------------------------------------------
# Full module forward
# ---------------------------------------------------------------------------
def transf_atten_rel(key, query, value, pos, key_mask,
                     wk, bk, wq, bq, wv, bv, wr, br, u, v_param,
                     wo, bo, gamma, beta, *,
                     num_heads, scaled=True, eps=1e-12, row_tile=256):
    """key/query/value: [B, S, H]; pos: [B, S, S, H]; key_mask: [B, S]."""
    b, s, h = query.shape
    d = h // num_heads
    scale = (1.0 / math.sqrt(d)) if scaled else 1.0

    # Linear projections (weights stored as [in, out], i.e. torch W^T).
    k_p = _dense(key.reshape(b * s, h), wk, bk, row_tile=row_tile).reshape(b, s, h)
    q_p = _dense(query.reshape(b * s, h), wq, bq, row_tile=row_tile).reshape(b, s, h)
    v_p = _dense(value.reshape(b * s, h), wv, bv, row_tile=row_tile).reshape(b, s, h)
    r_p = _dense(pos.reshape(b * s * s, h), wr, br,
                 row_tile=row_tile).reshape(b, s, s, h)

    # TODO(synk): attention dropout and hidden dropout are identity in eval
    # mode and are not implemented.
    ctx = _attention(q_p, k_p, v_p, r_p, u, v_param, key_mask,
                     num_heads=num_heads, scale=scale)          # [B, S, H]

    out2 = _self_output(ctx.reshape(b * s, h), query.reshape(b * s, h),
                        wo, bo, gamma, beta, eps=eps, row_tile=row_tile)
    return out2.reshape(b, s, h)


# ---------------------------------------------------------------------------
# Pure-JAX reference (mirrors the PyTorch module)
# ---------------------------------------------------------------------------
def _reference(key, query, value, pos, key_mask,
               wk, bk, wq, bq, wv, bv, wr, br, u, v_param, wo, bo,
               gamma, beta, num_heads, scaled, eps):
    b, s, h = query.shape
    d = h // num_heads
    kf = key.astype(jnp.float32) @ wk + bk
    qf = query.astype(jnp.float32) @ wq + bq
    vf = value.astype(jnp.float32) @ wv + bv
    rf = pos.astype(jnp.float32) @ wr + br

    def heads(t):
        return t.reshape(b, s, num_heads, d).transpose(0, 2, 1, 3)

    kh, qh, vh = heads(kf), heads(qf), heads(vf)
    rh = rf.reshape(b, s, s, num_heads, d)

    ac = jnp.einsum('bhqd,bhkd->bhqk', qh + u[None, :, None, :], kh)
    bd = jnp.einsum('bhqd,bqkhd->bhqk', qh + v_param[None, :, None, :], rh)
    score = ac + bd
    if scaled:
        score = score / math.sqrt(d)
    mask = key_mask[:, None, None, :] > 0
    score = jnp.where(mask, score, -1e15)
    attn = jax.nn.softmax(score, axis=-1)
    ctx = jnp.einsum('bhqk,bhkd->bhqd', attn, vh)
    ctx = ctx.transpose(0, 2, 1, 3).reshape(b, s, h)

    y = ctx @ wo + bo + query.astype(jnp.float32)
    mu = jnp.mean(y, axis=-1, keepdims=True)
    var = jnp.mean((y - mu) ** 2, axis=-1, keepdims=True)
    out = (y - mu) * lax.rsqrt(var + eps) * gamma + beta
    return out.astype(query.dtype)


if __name__ == "__main__":
    # Small config: hidden=32, heads=4 (per-head 8), batch=2, seq=8.
    B, S, H, NH = 2, 8, 32, 4
    D = H // NH
    EPS = 1e-12
    SCALED = True

    keys = jax.random.split(jax.random.PRNGKey(0), 16)
    f32 = jnp.float32

    key_in = jax.random.normal(keys[0], (B, S, H), f32)
    query_in = jax.random.normal(keys[1], (B, S, H), f32)
    value_in = jax.random.normal(keys[2], (B, S, H), f32)
    pos_in = jax.random.normal(keys[3], (B, S, S, H), f32)
    lengths = jnp.array([S, S - 3])
    key_mask = (jnp.arange(S)[None, :] < lengths[:, None]).astype(jnp.int32)

    def lin(kw, kb, din, dout, scl=0.05):
        return (jax.random.normal(kw, (din, dout), f32) * scl,
                jax.random.normal(kb, (1, dout), f32) * scl)

    wk, bk = lin(keys[4], keys[5], H, H)
    wq, bq = lin(keys[6], keys[7], H, H)
    wv, bv = lin(keys[8], keys[9], H, H)
    wr, br = lin(keys[10], keys[11], H, H)
    wo, bo = lin(keys[12], keys[13], H, H)
    u_p = jax.random.normal(keys[14], (NH, D), f32)
    v_p = jax.random.normal(keys[15], (NH, D), f32)
    gamma = jnp.ones((1, H), f32)
    beta = jnp.zeros((1, H), f32)

    out = transf_atten_rel(key_in, query_in, value_in, pos_in, key_mask,
                           wk, bk, wq, bq, wv, bv, wr, br, u_p, v_p,
                           wo, bo, gamma, beta,
                           num_heads=NH, scaled=SCALED, eps=EPS)
    out = jax.block_until_ready(out)

    ref = _reference(key_in, query_in, value_in, pos_in, key_mask,
                     wk, bk, wq, bq, wv, bv, wr, br, u_p, v_p, wo, bo,
                     gamma, beta, NH, SCALED, EPS)

    assert out.shape == (B, S, H)
    assert jnp.allclose(out, ref, atol=1e-4, rtol=1e-4)

    print("KERNEL_OK")
</pallas_src>

<mosaic_0001>
module attributes {stable_mosaic.version = 11 : i64} {
  func.func @_dense_kernel(%arg0: i32, %arg1: memref<8x32xf32, #tpu.memory_space<vmem>>, %arg2: memref<32x32xf32, #tpu.memory_space<vmem>>, %arg3: memref<1x32xf32, #tpu.memory_space<vmem>>, %arg4: memref<8x32xf32, #tpu.memory_space<vmem>>) attributes {dimension_semantics = [#tpu.dimension_semantics<parallel>], iteration_bounds = array<i64: 2>, scalar_prefetch = 0 : i64, scratch_operands = 0 : i64, tpu.core_type = #tpu.core_type<tc>, window_params = [{transform_indices = @transform_0, window_bounds = array<i64: 8, 32>}, {pipeline_mode = #tpu.pipeline_mode<synchronous>, transform_indices = @transform_1, window_bounds = array<i64: 32, 32>}, {pipeline_mode = #tpu.pipeline_mode<synchronous>, transform_indices = @transform_2, window_bounds = array<i64: 1, 32>}, {transform_indices = @transform_3, window_bounds = array<i64: 8, 32>}]} {
    %c0 = arith.constant 0 : index
    %c0_0 = arith.constant 0 : index
    %0 = vector.load %arg1[%c0, %c0_0] : memref<8x32xf32, #tpu.memory_space<vmem>>, vector<8x32xf32>
    %c0_1 = arith.constant 0 : index
    %c0_2 = arith.constant 0 : index
    %1 = vector.load %arg2[%c0_1, %c0_2] : memref<32x32xf32, #tpu.memory_space<vmem>>, vector<32x32xf32>
    %cst = arith.constant dense<0.000000e+00> : vector<8x32xf32>
    %2 = tpu.matmul %0, %1, %cst {dimension_numbers = #tpu.dot_dimension_numbers<[1], [0], [0], [1], [0, 0, 1, 1], [], []>} : vector<8x32xf32>, vector<32x32xf32>, vector<8x32xf32> -> vector<8x32xf32>
    %c0_3 = arith.constant 0 : index
    %c0_4 = arith.constant 0 : index
    %3 = vector.load %arg3[%c0_3, %c0_4] : memref<1x32xf32, #tpu.memory_space<vmem>>, vector<1x32xf32>
    %4 = vector.broadcast %3 : vector<1x32xf32> to vector<8x32xf32>
    %5 = arith.addf %2, %4 : vector<8x32xf32>
    %c0_5 = arith.constant 0 : index
    %c0_6 = arith.constant 0 : index
    %6 = vector.load %arg4[%c0_5, %c0_6] : memref<8x32xf32, #tpu.memory_space<vmem>>, vector<8x32xf32>
    tpu.vector_store %arg4[%c0_5, %c0_6], %5 {strides = array<i32>} : memref<8x32xf32, #tpu.memory_space<vmem>>, vector<8x32xf32>,
    return
  }
  func.func @transform_0(%arg0: i32) -> (i32, i32) {
    %c0_i32 = arith.constant 0 : i32
    %c0_i32_0 = arith.constant 0 : i32
    return %arg0, %c0_i32 : i32, i32
  }
  func.func @transform_1(%arg0: i32) -> (i32, i32) {
    %c0_i32 = arith.constant 0 : i32
    %c0_i32_0 = arith.constant 0 : i32
    %c0_i32_1 = arith.constant 0 : i32
    return %c0_i32, %c0_i32_0 : i32, i32
  }
  func.func @transform_2(%arg0: i32) -> (i32, i32) {
    %c0_i32 = arith.constant 0 : i32
    %c0_i32_0 = arith.constant 0 : i32
    %c0_i32_1 = arith.constant 0 : i32
    return %c0_i32, %c0_i32_0 : i32, i32
  }
  func.func @transform_3(%arg0: i32) -> (i32, i32) {
    %c0_i32 = arith.constant 0 : i32
    %c0_i32_0 = arith.constant 0 : i32
    return %arg0, %c0_i32 : i32, i32
  }
}

</mosaic_0001>

<bundles_post_ra>
// kernel: tpu_custom_call.1
= control target key start
LH: loop header
LB: loop body
LE: loop exit
PB: predicated region body
PF: predicated region fallthrough
CT: control target
= control target key end

     0   :  { %8 = vsyncpa [#allocation3], 0  ;;  %s704_s0 = inlined_call_operand.hbm [shape: f32[16,32], index: 0, kind: input, shape index: {}]   ;;  %s705_s1 = inlined_call_operand.hbm [shape: f32[32,32], index: 1, kind: input, shape index: {}]   ;;  %s706_s2 = inlined_call_operand.vmem [shape: f32[1,32], index: 2, kind: input, shape index: {}]   ;;  %s707_s3 = inlined_call_operand.hbm [shape: f32[16,32], index: 3, kind: output, shape index: {}]  }
   0x1   :  { %10 = vsyncpa [#allocation3 + $0x1], 0 }
   0x2   :  { %11 = vsyncpa [#allocation6], 0 }
   0x3   :  { %12 = vsyncpa [#allocation4], 0 }
   0x4   :  { %14 = vsyncpa [#allocation4 + $0x1], 0  ;;  %s565_s12 = smov 0   ;;  %s567_s13 = smov 0  }
   0x5   :  { %s569_s14 = smov 0   ;;  %s571_s15 = smov 0  }
   0x6 LB: > { %s130_s18 = sshll.u32 %s705_s1, 4  ;;  %s589_s19 = sadd.s32 4294967295, %s540_s15   ;;  %s540_s15 = sphi %s571_s15, %s717_s15   ;;  %s536_s14 = sphi %s569_s14, %s716_s14   ;;  %s532_s13 = sphi %s567_s13, %s715_s13   ;;  %s528_s12 = sphi %s565_s12, %s714_s12   ;;  %s131_s18 = int_to_ptr.hbm [resolvable:$true] %s130_s18 }
   0x7   : > { %p336_p0 = scmp.ge.s32.totalorder %s540_s15, 1  ;;  %p41_p1 = scmp.eq.s32.totalorder %s589_s19, 0 }
   0x8   : > { %p119_p2 = scmp.lt.s32.totalorder %s540_s15, 3  ;;  %s542_s21 = smov [#allocation5]  }
   0x9   : > { %s132_s22 = sshll.u32 %s542_s21, 4  ;;  %s543_s23 = smov 128   ;;  %s133_s22 = int_to_ptr.vmem [resolvable:$true] %s132_s22 }
   0xa   : > { %p594_p3 = pnand %p336_p0, %p119_p2  ;;  %s544_s24 = smov 8  }
   0xb   : > { %s335_s25 = sadd.s32 4294967294, %s540_s15   ;;  %s605_s26 = sadd.s32 1, %s540_s15  }
   0xc   : > { %p358_p4 = pneg %p594_p3  ;;  %s27_s27 = sadd.s32 1, %s536_s14 }
   0xd   : > { %s24_s28 = ssub.s32 %s540_s15, %s605_s26  ;;  %p34_p7 = scmp.ne.s32.totalorder %s536_s14, %s532_s13 }
   0xe   : > { %p359_p6 = pnand %p358_p4, %p41_p1  ;;  %p25_p8 = scmp.eq.s32.totalorder %s24_s28, 0 }
   0xf   : > { %p35_p9 = scmp.eq.s32.totalorder %s540_s15, 0  ;;  %p40_p10 = scmp.ne.s32.totalorder %s532_s13, %s528_s12 }
  0x10   : > { %361 = dma.hbm_to_vmem [thread:$0]  (!%p359_p6), %s131_s18, 512, %s133_s22, [#allocation6], %s543_s23, %s543_s23, %s544_s24  }
  0x11   : > { %p106_p11 = scmp.eq.s32.totalorder %s589_s19, 1  ;;  %p621_p12 = por %p41_p1, %p40_p10 }
  0x12   : > { %s617_s29 = scalar_select %p25_p8, %s536_s14, %s27_s27  }
  0x13   : > { %p625_p13 = por %p106_p11, %p34_p7  ;;  %p112_p0 = scmp.eq.s32.totalorder %s335_s25, 1 }
  0x14   : > { %p36_p2 = por %p35_p9, %p34_p7  ;;  %s149_s5 = sand.u32 1, %s536_s14  }
  0x15   : > { %p630_p4 = por %p112_p0, %p40_p10  ;;  %p371_p6 = scmp.lt.s32.totalorder %s540_s15, 2 }
  0x16   : > { %s339_s7 = sshll.u32 %s149_s5, 3  ;;  %s340_s8 = sshll.u32 %s540_s15, 3 }
  0x17   : > { %s157_s11 = scalar_lea.hbm %s704_s0, %s340_s8  ;;  %s153_s17 = scalar_lea.vmem [#allocation2], %s339_s7 }
  0x18   : > { %s159_s16 = sshll.u32 %s157_s11, 4  ;;  %s161_s18 = sshll.u32 %s153_s17, 4  ;;  %s160_s16 = int_to_ptr.hbm [resolvable:$true] %s159_s16  ;;  %s162_s18 = int_to_ptr.vmem [resolvable:$true] %s161_s18 }
  0x19   : > { %p639_p8 = pnand %p371_p6, %p36_p2  ;;  %s150_s22 = scalar_lea.sflag [#allocation3], %s149_s5 }
  0x1a   : > { %s440_s23 = sshra.s32 %s160_s16, 4  ;;  %s447_s28 = scalar_lea.hbm %s704_s0, 16  ;;  %s441_s23 = int_to_ptr.hbm [resolvable:$true] %s440_s23 }
  0x1b   : > { %s442_s24 = scalar_lea.hbm %s441_s23, 8  ;;  %p444_p9 = pneg %p639_p8 }
  0x1c   : > { %p443_p7 = scmp.ne.s32.totalorder %s441_s23, %s442_s24  ;;  %p448_p0 = scmp.lt.s32.totalorder %s441_s23, %s704_s0 }
  0x1d   : > { %p449_p2 = scmp.lt.s32.totalorder %s447_s28, %s442_s24 }
  0x1e   : > { %p445_p10 = pnand %p444_p9, %p443_p7 }
  0x1f   : > { %p450_p6 = por %p449_p2, %p448_p0 }
  0x20   : > { %p446_p11 = pneg %p445_p10 }
  0x22   : > { %p451_p5 = pnand %p450_p6, %p446_p11 }
  0x24   : > { %454 = shalt.err (!%p451_p5)
}
  0x25   : > { %365 = dma.hbm_to_vmem [thread:$0]  (!%p639_p8), %s160_s16, 128, %s162_s18, %s150_s22  }
  0x26   : > { %170 = sbr.rel (%p594_p3) target bundleno = 185 (0xb9), region = 32  ;;  %s656_s5 = sand.u32 (!%p594_p3), 1, %s532_s13  }
  0x27   : > { %s342_s9 = sshll.u32 (!%p594_p3), %s656_s5, 3  ;;  %s173_s10 = scalar_lea.sflag (!%p594_p3), [#allocation3], %s656_s5 }
  0x28   : > { %s176_s11 = scalar_lea.vmem (!%p594_p3), [#allocation2], %s342_s9 }
  0x2b   : > { %515 = dma.done.wait (%p621_p12), %s173_s10, 128  }
  0x2c   : > { %517 = vsyncadd (%p621_p12), %s173_s10, 4294967168 }
  0x2d   : > { %519 = dma.done.wait (%p41_p1), [#allocation6], 512  }
  0x2e   : > { %521 = vsyncadd (%p41_p1), [#allocation6], 4294966784  ;;  %v209_v0 = vld [vmem:[#allocation5 + $0x18] sm:$0xff]  ;;  %v208_v1 = vld [vmem:[#allocation5 + $0x10] sm:$0xff]  ;;  %vm214_vm0 = vcmask 261120   ;;  %s347_s20 = sshll.u32 %s589_s19, 3 }
  0x2f   : > { %230 = vmatpush.msra.mxu0 %v209_v0  ;;  %v207_v2 = vld [vmem:[#allocation5 + $0x8] sm:$0xff]  ;;  %v206_v3 = vld [vmem:[#allocation5] sm:$0xff]  ;;  %v205_v4 = vld [vmem:[%s176_s11] sm:$0xff]  ;;  %s250_s17 = scalar_lea.hbm %s707_s3, %s347_s20  ;;  %s204_s22 = scalar_lea.vmem [#allocation7], %s342_s9 }
  0x30   : > { %v409_v5 = vld [vmem:[%s706_s2] ss:$0 sm:$0xff]  ;;  %s252_s23 = sshll.u32 %s204_s22, 4  ;;  %s254_s24 = sshll.u32 %s250_s17, 4  ;;  %s253_s23 = int_to_ptr.vmem [resolvable:$true] %s252_s23  ;;  %s255_s24 = int_to_ptr.hbm [resolvable:$true] %s254_s24 }
  0x31   : > { %231 = vmatpush.msra.mxu0 %v208_v1  ;;  %s240_s25 = scalar_lea.sflag [#allocation4], %s656_s5  ;;  %s484_s27 = sshra.s32 %s255_s24, 4  ;;  %s485_s27 = int_to_ptr.hbm [resolvable:$true] %s484_s27 }
  0x32   : > { %s486_s19 = scalar_lea.hbm %s485_s27, 8  ;;  %s490_s8 = scalar_lea.hbm %s707_s3, 16 }
  0x33   : > { %232 = vmatpush.msra.mxu0 %v207_v2  ;;  %p487_p1 = scmp.ne.s32.totalorder %s485_s27, %s486_s19  ;;  %p491_p12 = scmp.lt.s32.totalorder %s485_s27, %s707_s3 }
  0x34   : > { %p492_p8 = scmp.lt.s32.totalorder %s490_s8, %s486_s19 }
  0x35   : > { %233 = vmatpush.msra.mxu0 %v206_v3  ;;  %p488_p3 = pnand %p487_p1, %p625_p13 }
  0x36   : > { %345 = vmatmul.msk.f32.vlgmr.msra.gmra.mxu0 %vm214_vm0, %v205_v4  ;;  %p493_p7 = por %p492_p8, %p491_p12 }
  0x37   : > { %p489_p5 = pneg %p488_p3 }
  0x39   : > { %p494_p9 = pnand %p493_p7, %p489_p5 }
  0xb3   : > { %v235_v6 = vpop.f32.mrf.mxu0 }
  0xb4   : > { %v236_v7 = vadd.f32 %v409_v5, %v235_v6 }
  0xb6   : > { %238 = vst.msk [vmem:[%s204_s22] sm:$0xff] %vm214_vm0, %v236_v7 }
  0xb7   : > { %497 = shalt.err (!%p494_p9)
}
  0xb8   : > { %356 = dma.vmem_to_hbm [thread:$0]  (%p625_p13), %s253_s23, 128, %s255_s24, %s240_s25  }
  0xb9 PF: > { %s266_s5 = sand.u32 1, %s528_s12   ;;  %p713_p10 = scmp.ge.s32.totalorder %s540_s15, 2 }
  0xba   : > { %s267_s11 = scalar_lea.sflag [#allocation4], %s266_s5 }
  0xbb   : > { %p367_p11 = pnand %p713_p10, %p630_p4 }
  0xbd   : > { %p368_p0 = pneg %p367_p11 }
  0xbf   : > { %523 = dma.done.wait (%p368_p0), %s267_s11, 128  }
  0xc0   : > { %525 = vsyncadd (%p368_p0), %s267_s11, 4294967168  ;;  %p17_p2 = scmp.ge.s32.totalorder %s605_s26, 4   ;;  %s714_s12 = smov %s532_s13 }
  0xc1   : > { %s715_s13 = smov %s536_s14  ;;  %s716_s14 = smov %s617_s29 }
  0xc2   : > { %s717_s15 = smov %s605_s26  ;;  %19 = sbr.rel (!%p17_p2) target bundleno = 6 (0x6), region = 81 }
  0xc7   :  { %273 = vsyncpa [#allocation3], 1 }
  0xc8   :  { %275 = vsyncpa [#allocation3 + $0x1], 1 }
  0xc9   :  { %276 = vsyncpa [#allocation6], 1 }
  0xca   :  { %277 = vsyncpa [#allocation4], 1 }
  0xcb   :  { %279 = vsyncpa [#allocation4 + $0x1], 1 }

</bundles_post_ra>
